<compile_context>
chip_gen: v7x
topology: tpu7x:2x2x1
jax: 0.10.0
libtpu: 0.0.40
codegen_flags: <defaults>
</compile_context>

<pallas_src>
import jax
import jax.numpy as jnp
from jax import lax
from jax.experimental import pallas as pl
from jax.experimental.pallas import tpu as pltpu

SIZE = 10
N = SIZE * SIZE          # 100 (logical feature dim)
NPAD = 128               # lane-dense padded feature dim
NEG_MASK = -3.0e38       # baked pad-lane mask (finite, << any real logit)


def mlp_argmax_kernel(x_ref, w_ref, pos_ref):
    x = x_ref[...]                                             # (1, 128) f32; lane 100 == 1.0

    # ---- 3-layer MLP, biases folded into row 100 of each packed weight ----
    # bf16 operands feed the MXU natively; accumulation stays f32.
    h = jnp.dot(x.astype(jnp.bfloat16), w_ref[0],
                preferred_element_type=jnp.float32)
    h = jnp.maximum(h, 0.0)                                    # lane 100 stays 1.0
    h = jnp.dot(h.astype(jnp.bfloat16), w_ref[1],
                preferred_element_type=jnp.float32)
    h = jnp.maximum(h, 0.0)                                    # lane 100 stays 1.0
    h = jnp.dot(h.astype(jnp.bfloat16), w_ref[2],
                preferred_element_type=jnp.float32)
    # Layer-3 row 100 writes NEG_MASK into lanes 100..127, so padded lanes can
    # never win the argmax -- no explicit mask/select needed here.

    # ---- penalty ----
    y = h - jnp.abs(x) * 1e11                                  # (1, 128) f32

    # ---- argmax (first occurrence on ties): max, then index-min (2 XLU reductions) ----
    lane_idx = lax.broadcasted_iota(jnp.int32, y.shape, 1)
    max_val = jnp.max(y)
    cand = jnp.where(y == max_val, lane_idx, jnp.int32(NPAD))
    pos_ref[0] = jnp.min(cand).astype(jnp.int32)


def pack_params(w1, b1, w2, b2, w3, b3):
    """One-time packing.  Weights are (in_features, out_features) so y = x @ W
    (== PyTorch x @ W.T + b).  Bias goes into row N; layers 1/2 put 1.0 at
    [N, N] so the constant lane survives ReLU; layer 3 puts NEG_MASK into its
    padded output lanes so they lose the argmax.  Stored as bf16 (96 KiB)."""
    def pad_layer(w, b, *, carry_const, mask_pad):
        W = jnp.zeros((NPAD, NPAD), jnp.float32)
        W = W.at[:N, :N].set(w.astype(jnp.float32))
        W = W.at[N, :N].set(b.astype(jnp.float32))
        if carry_const:
            W = W.at[N, N].set(1.0)
        if mask_pad:
            W = W.at[N, N:].set(NEG_MASK)
        return W.astype(jnp.bfloat16)

    return jnp.stack([
        pad_layer(w1, b1, carry_const=True, mask_pad=False),
        pad_layer(w2, b2, carry_const=True, mask_pad=False),
        pad_layer(w3, b3, carry_const=False, mask_pad=True),
    ])                                                          # (3, 128, 128) bf16


_COST = pl.CostEstimate(
    flops=2 * 3 * NPAD * NPAD,                 # three 1x128 @ 128x128 matvecs
    transcendentals=0,
    bytes_accessed=3 * NPAD * NPAD * 2 + NPAD * 4 + 4,
)


@jax.jit
def model_forward(x, w_packed):
    """x: any shape with N elements (flattened inside, like torch.flatten)."""
    xf = jnp.reshape(x, (N,)).astype(jnp.float32)
    # Augmented lane 100 = 1.0 drives the folded biases; lanes 101..127 are 0.
    xf = jnp.concatenate(
        [xf, jnp.ones((1,), jnp.float32), jnp.zeros((NPAD - N - 1,), jnp.float32)]
    ).reshape(1, NPAD)

    vmem = pl.BlockSpec(memory_space=pltpu.MemorySpace.VMEM)
    pos = pl.pallas_call(
        mlp_argmax_kernel,
        out_shape=jax.ShapeDtypeStruct((1,), jnp.int32),
        in_specs=[vmem, vmem],
        out_specs=pl.BlockSpec(memory_space=pltpu.MemorySpace.SMEM),
        cost_estimate=_COST,
    )(xf, w_packed)[0]

    # Row/col arithmetic stays in the wrapper (trivial scalar XLA ops) so the
    # kernel epilogue ends right after the two reductions.
    row = (pos + 1) // SIZE
    c = (pos + 1) % SIZE - 1
    col = jnp.where(c < 0, c + SIZE, c)
    return row.astype(jnp.int32), col.astype(jnp.int32)


if __name__ == "__main__":
    key = jax.random.PRNGKey(0)
    kx, k1, k2, k3, k4, k5, k6 = jax.random.split(key, 7)

    # Deterministic PyTorch-Linear-style init: U(-1/sqrt(fan_in), +1/sqrt(fan_in)).
    bound = 1.0 / (N ** 0.5)
    w1 = jax.random.uniform(k1, (N, N), jnp.float32, -bound, bound)
    b1 = jax.random.uniform(k2, (N,), jnp.float32, -bound, bound)
    w2 = jax.random.uniform(k3, (N, N), jnp.float32, -bound, bound)
    b2 = jax.random.uniform(k4, (N,), jnp.float32, -bound, bound)
    w3 = jax.random.uniform(k5, (N, N), jnp.float32, -bound, bound)
    b3 = jax.random.uniform(k6, (N,), jnp.float32, -bound, bound)

    # One-time weight packing / padding (kept resident and reused across calls).
    w_packed = jax.block_until_ready(pack_params(w1, b1, w2, b2, w3, b3))

    # Example input: a (size, size) grid (flattened to size**2 elements).
    x = jax.random.normal(kx, (SIZE, SIZE), dtype=jnp.float32)

    row, col = model_forward(x, w_packed)
    jax.block_until_ready((row, col))
    print("KERNEL_OK")
</pallas_src>

<mosaic_0001>
module attributes {stable_mosaic.version = 11 : i64} {
  func.func @mlp_argmax_kernel(%arg0: memref<1x128xf32, #tpu.memory_space<vmem>>, %arg1: memref<3x128x128xbf16, #tpu.memory_space<vmem>>, %arg2: memref<1xi32, #tpu.memory_space<smem>>) attributes {dimension_semantics = [], scalar_prefetch = 0 : i64, scratch_operands = 0 : i64, tpu.core_type = #tpu.core_type<tc>} {
    %c0 = arith.constant 0 : index
    %c0_0 = arith.constant 0 : index
    %0 = vector.load %arg0[%c0, %c0_0] : memref<1x128xf32, #tpu.memory_space<vmem>>, vector<1x128xf32>
    %1 = arith.truncf %0 : vector<1x128xf32> to vector<1x128xbf16>
    %c0_1 = arith.constant 0 : index
    %c0_2 = arith.constant 0 : index
    %c0_3 = arith.constant 0 : index
    %2 = vector.load %arg1[%c0_1, %c0_2, %c0_3] : memref<3x128x128xbf16, #tpu.memory_space<vmem>>, vector<1x128x128xbf16>
    %3 = vector.shape_cast %2 : vector<1x128x128xbf16> to vector<128x128xbf16>
    %cst = arith.constant dense<0.000000e+00> : vector<1x128xf32>
    %4 = tpu.matmul %1, %3, %cst {dimension_numbers = #tpu.dot_dimension_numbers<[1], [0], [0], [1], [0, 0, 1, 1], [], []>} : vector<1x128xbf16>, vector<128x128xbf16>, vector<1x128xf32> -> vector<1x128xf32>
    %cst_4 = arith.constant 0.000000e+00 : f32
    %5 = vector.broadcast %cst_4 : f32 to vector<1x128xf32>
    %6 = arith.maximumf %4, %5 : vector<1x128xf32>
    %7 = arith.truncf %6 : vector<1x128xf32> to vector<1x128xbf16>
    %c1 = arith.constant 1 : index
    %c0_5 = arith.constant 0 : index
    %c0_6 = arith.constant 0 : index
    %8 = vector.load %arg1[%c1, %c0_5, %c0_6] : memref<3x128x128xbf16, #tpu.memory_space<vmem>>, vector<1x128x128xbf16>
    %9 = vector.shape_cast %8 : vector<1x128x128xbf16> to vector<128x128xbf16>
    %cst_7 = arith.constant dense<0.000000e+00> : vector<1x128xf32>
    %10 = tpu.matmul %7, %9, %cst_7 {dimension_numbers = #tpu.dot_dimension_numbers<[1], [0], [0], [1], [0, 0, 1, 1], [], []>} : vector<1x128xbf16>, vector<128x128xbf16>, vector<1x128xf32> -> vector<1x128xf32>
    %cst_8 = arith.constant 0.000000e+00 : f32
    %11 = vector.broadcast %cst_8 : f32 to vector<1x128xf32>
    %12 = arith.maximumf %10, %11 : vector<1x128xf32>
    %13 = arith.truncf %12 : vector<1x128xf32> to vector<1x128xbf16>
    %c2 = arith.constant 2 : index
    %c0_9 = arith.constant 0 : index
    %c0_10 = arith.constant 0 : index
    %14 = vector.load %arg1[%c2, %c0_9, %c0_10] : memref<3x128x128xbf16, #tpu.memory_space<vmem>>, vector<1x128x128xbf16>
    %15 = vector.shape_cast %14 : vector<1x128x128xbf16> to vector<128x128xbf16>
    %cst_11 = arith.constant dense<0.000000e+00> : vector<1x128xf32>
    %16 = tpu.matmul %13, %15, %cst_11 {dimension_numbers = #tpu.dot_dimension_numbers<[1], [0], [0], [1], [0, 0, 1, 1], [], []>} : vector<1x128xbf16>, vector<128x128xbf16>, vector<1x128xf32> -> vector<1x128xf32>
    %17 = math.absf %0 : vector<1x128xf32>
    %cst_12 = arith.constant 9.99999979E+10 : f32
    %18 = vector.broadcast %cst_12 : f32 to vector<1x128xf32>
    %19 = arith.mulf %17, %18 : vector<1x128xf32>
    %20 = arith.subf %16, %19 : vector<1x128xf32>
    %21 = tpu.iota {dimensions = array<i32: 1>} : vector<1x128xi32>
    %22 = vector.shape_cast %20 : vector<1x128xf32> to vector<1x1x128xf32>
    %cst_13 = arith.constant dense<0xFF800000> : vector<1xf32>
    %23 = vector.multi_reduction <maximumf>, %22, %cst_13 [1, 2] : vector<1x1x128xf32> to vector<1xf32>
    %24 = vector.shape_cast %23 : vector<1xf32> to vector<1x1x1xf32>
    %25 = vector.extract %24[0, 0, 0] : f32 from vector<1x1x1xf32>
    %26 = vector.broadcast %25 : f32 to vector<1x128xf32>
    %27 = arith.cmpf oeq, %20, %26 : vector<1x128xf32>
    %c128_i32 = arith.constant 128 : i32
    %28 = vector.broadcast %c128_i32 : i32 to vector<1x128xi32>
    %29 = arith.select %27, %21, %28 : vector<1x128xi1>, vector<1x128xi32>
    %30 = vector.shape_cast %29 : vector<1x128xi32> to vector<1x1x128xi32>
    %cst_14 = arith.constant dense<2147483647> : vector<1xi32>
    %31 = vector.multi_reduction <minsi>, %30, %cst_14 [1, 2] : vector<1x1x128xi32> to vector<1xi32>
    %32 = vector.shape_cast %31 : vector<1xi32> to vector<1x1x1xi32>
    %33 = vector.extract %32[0, 0, 0] : i32 from vector<1x1x1xi32>
    %c0_15 = arith.constant 0 : index
    %34 = memref.load %arg2[%c0_15] : memref<1xi32, #tpu.memory_space<smem>>
    memref.store %33, %arg2[%c0_15] : memref<1xi32, #tpu.memory_space<smem>>
    return
  }
}

</mosaic_0001>

<bundles_post_ra>
// kernel: model_forward.1
= control target key start
LH: loop header
LB: loop body
LE: loop exit
PB: predicated region body
PF: predicated region fallthrough
CT: control target
= control target key end

     0   :  { %7 = vsyncpa [#allocation3], 0  ;;  %s668_s0 = inlined_call_operand.vmem [shape: f32[1,128], index: 0, kind: input, shape index: {}]   ;;  %s669_s1 = inlined_call_operand.hbm [shape: bf16[3,128,128], index: 1, kind: input, shape index: {}]   ;;  %s670_s2 = inlined_call_operand.hbm [shape: s32[1], index: 2, kind: output, shape index: {}]  }
   0x1   :  { %8 = vsyncpa [#allocation4], 0  ;;  %s588_s9 = smov [#allocation2]   ;;  %s552_s13 = scalar_lea.hbm %s669_s1, 3072 }
   0x2   :  { %s16_s10 = sshll.u32 %s588_s9, 4  ;;  %p553_p0 = scmp.ne.s32.totalorder %s669_s1, %s552_s13  ;;  %s17_s10 = int_to_ptr.vmem [resolvable:$true] %s16_s10 }
   0x3   :  { %p556_p1 = scmp.lt.u32.totalorder %s552_s13, %s669_s1 }
   0x5   :  { %p558_p2 = pnand %p556_p1, %p553_p0 }
   0x7   :  { %561 = shalt.err (!%p558_p2)
}
   0x8   :  { %s562_s18 = scalar_lea.vmem %s17_s10, 3072  ;;  %p567_p4 = scmp.lt.s32.totalorder %s17_s10, %s17_s10 }
   0x9   :  { %p563_p3 = scmp.ne.s32.totalorder %s17_s10, %s562_s18  ;;  %p568_p5 = scmp.lt.s32.totalorder %s562_s18, %s562_s18 }
   0xb   :  { %p569_p6 = por %p568_p5, %p567_p4 }
   0xd   :  { %p570_p7 = pnand %p569_p6, %p563_p3 }
   0xf   :  { %573 = shalt.err (!%p570_p7)
}
  0x10   :  { %s589_s19 = smov 64   ;;  %s590_s20 = smov 4  }
  0x11   :  { %22 = dma.hbm_to_vmem [thread:$0]  %s669_s1, 3072, %s17_s10, [#allocation3], %s589_s19, %s589_s19, %s590_s20  }
  0x12   :  { %584 = dma.done.wait [#allocation3], 3072  }
  0x13   :  { %585 = vsyncadd [#allocation3], 4294964224  ;;  %v591_v0 = vmov 0.0   ;;  %vm592_vm0 = vmmov 0   ;;  %v528_v1 = vld [vmem:[#allocation2] sm:$0xff]   ;;  %v529_v2 = vld [vmem:[#allocation2 + $0x8] sm:$0xff]   ;;  %v350_v54 = vlaneseq }
  0x14   :  { %458 = vmatprep.subr.bf16.mxu0 %v591_v0  ;;  %474 = vmatprep.mubr.msk.bf16.mxu0 %vm592_vm0, %v591_v0  ;;  %v530_v3 = vld [vmem:[#allocation2 + $0x10] sm:$0xff]   ;;  %v536_v4 = vld [vmem:[#allocation2 + $0x40] sm:$0xff]   ;;  %v531_v5 = vld [vmem:[#allocation2 + $0x18] sm:$0xff]   ;;  %vm352_vm1 = vcmask 1040384   ;;  %s574_s27 = scalar_lea.hbm %s670_s2, 16 }
  0x15   :  { %478 = vmatprep.subr.bf16.mxu1 %v591_v0  ;;  %494 = vmatprep.mubr.msk.bf16.mxu1 %vm592_vm0, %v591_v0  ;;  %v537_v6 = vld [vmem:[#allocation2 + $0x48] sm:$0xff]   ;;  %v532_v7 = vld [vmem:[#allocation2 + $0x20] sm:$0xff]   ;;  %v538_v8 = vld [vmem:[#allocation2 + $0x50] sm:$0xff]   ;;  %v351_v55 = vand.u32 127, %v350_v54  ;;  %p575_p8 = scmp.ne.s32.totalorder %s670_s2, %s574_s27  ;;  %p578_p9 = scmp.lt.u32.totalorder %s574_s27, %s670_s2 }
  0x16   :  { %459 = vmatpush3.bf16.msra.mxu0 %v528_v1  ;;  %479 = vmatpush3.bf16.msra.mxu1 %v536_v4  ;;  %v533_v9 = vld [vmem:[#allocation2 + $0x28] sm:$0xff]   ;;  %v539_v10 = vld [vmem:[#allocation2 + $0x58] sm:$0xff]   ;;  %v534_v11 = vld [vmem:[#allocation2 + $0x30] sm:$0xff]  }
  0x17   :  { %460 = vmatprep.subr.bf16.mxu0 %v591_v0  ;;  %480 = vmatprep.subr.bf16.mxu1 %v591_v0  ;;  %v540_v12 = vld [vmem:[#allocation2 + $0x60] sm:$0xff]   ;;  %v535_v13 = vld [vmem:[#allocation2 + $0x38] sm:$0xff]   ;;  %v541_v15 = vld [vmem:[#allocation2 + $0x68] sm:$0xff]   ;;  %p580_p10 = pnand %p578_p9, %p575_p8 }
  0x18   :  { %v27_v14 = vld [vmem:[%s668_s0] sm:$0x1]  ;;  %v542_v17 = vld [vmem:[#allocation2 + $0x70] sm:$0xff]   ;;  %v543_v18 = vld [vmem:[#allocation2 + $0x78] sm:$0xff]  }
  0x19   :  { %v28_v16 = vpack.c.bf16 %v27_v14, %v27_v14  ;;  %v544_v19 = vld [vmem:[#allocation2 + $0x80] sm:$0xff]   ;;  %v545_v20 = vld [vmem:[#allocation2 + $0x88] sm:$0xff]   ;;  %v546_v21 = vld [vmem:[#allocation2 + $0x90] sm:$0xff]   ;;  %v347_v39 = vand.u32 2147483647, %v27_v14 }
  0x1a   :  { %461 = vmatpush3.bf16.msra.mxu0 %v529_v2  ;;  %481 = vmatpush3.bf16.msra.mxu1 %v537_v6  ;;  %v547_v22 = vld [vmem:[#allocation2 + $0x98] sm:$0xff]   ;;  %v548_v23 = vld [vmem:[#allocation2 + $0xa0] sm:$0xff]   ;;  %v549_v24 = vld [vmem:[#allocation2 + $0xa8] sm:$0xff]  }
  0x1b   :  { %462 = vmatprep.subr.bf16.mxu0 %v591_v0  ;;  %482 = vmatprep.subr.bf16.mxu1 %v591_v0  ;;  %v550_v25 = vld [vmem:[#allocation2 + $0xb0] sm:$0xff]   ;;  %v551_v32 = vld [vmem:[#allocation2 + $0xb8] sm:$0xff]   ;;  %v348_v40 = vmul.f32 1e+11, %v347_v39 }
  0x1e   :  { %463 = vmatpush3.bf16.msra.mxu0 %v530_v3  ;;  %483 = vmatpush3.bf16.msra.mxu1 %v538_v8 }
  0x1f   :  { %464 = vmatprep.subr.bf16.mxu0 %v591_v0  ;;  %484 = vmatprep.subr.bf16.mxu1 %v591_v0 }
  0x22   :  { %465 = vmatpush3.bf16.msra.mxu0 %v531_v5  ;;  %485 = vmatpush3.bf16.msra.mxu1 %v539_v10 }
  0x23   :  { %466 = vmatprep.subr.bf16.mxu0 %v591_v0  ;;  %486 = vmatprep.subr.bf16.mxu1 %v591_v0 }
  0x26   :  { %467 = vmatpush3.bf16.msra.mxu0 %v532_v7  ;;  %487 = vmatpush3.bf16.msra.mxu1 %v540_v12 }
  0x27   :  { %468 = vmatprep.subr.bf16.mxu0 %v591_v0  ;;  %488 = vmatprep.subr.bf16.mxu1 %v591_v0 }
  0x2a   :  { %469 = vmatpush3.bf16.msra.mxu0 %v533_v9  ;;  %489 = vmatpush3.bf16.msra.mxu1 %v541_v15 }
  0x2b   :  { %470 = vmatprep.subr.bf16.mxu0 %v591_v0  ;;  %490 = vmatprep.subr.bf16.mxu1 %v591_v0 }
  0x2e   :  { %471 = vmatpush3.bf16.msra.mxu0 %v534_v11  ;;  %491 = vmatpush3.bf16.msra.mxu1 %v542_v17 }
  0x2f   :  { %472 = vmatprep.subr.bf16.mxu0 %v591_v0  ;;  %492 = vmatprep.subr.bf16.mxu1 %v591_v0 }
  0x32   :  { %473 = vmatpush3.bf16.msra.mxu0 %v535_v13  ;;  %493 = vmatpush3.bf16.msra.mxu1 %v543_v18 }
  0x33   :  { %498 = vmatprep.subr.bf16.mxu0 %v591_v0 }
  0x35   :  { %475 = vmatmul.mubr.bf16.vlgmr.msra.gmra.mrb[0].mxu0 %v28_v16 }
  0x36   :  { %514 = vmatprep.mubr.msk.bf16.mxu0 %vm592_vm0, %v591_v0  ;;  %499 = vmatpush3.bf16.msra.mxu0 %v544_v19 }
  0x37   :  { %500 = vmatprep.subr.bf16.mxu0 %v591_v0 }
  0x3a   :  { %501 = vmatpush3.bf16.msra.mxu0 %v545_v20 }
  0x3b   :  { %502 = vmatprep.subr.bf16.mxu0 %v591_v0 }
  0x3e   :  { %503 = vmatpush3.bf16.msra.mxu0 %v546_v21 }
  0x3f   :  { %504 = vmatprep.subr.bf16.mxu0 %v591_v0 }
  0x42   :  { %505 = vmatpush3.bf16.msra.mxu0 %v547_v22 }
  0x43   :  { %506 = vmatprep.subr.bf16.mxu0 %v591_v0 }
  0x46   :  { %507 = vmatpush3.bf16.msra.mxu0 %v548_v23 }
  0x47   :  { %508 = vmatprep.subr.bf16.mxu0 %v591_v0 }
  0x4a   :  { %509 = vmatpush3.bf16.msra.mxu0 %v549_v24 }
  0x4b   :  { %510 = vmatprep.subr.bf16.mxu0 %v591_v0 }
  0x4e   :  { %511 = vmatpush3.bf16.msra.mxu0 %v550_v25 }
  0x4f   :  { %512 = vmatprep.subr.bf16.mxu0 %v591_v0 }
  0x52   :  { %513 = vmatpush3.bf16.msra.mxu0 %v551_v32 }
 0x108   :  { %v127_v26 = vpop.f32.mrb[0].mxu0 }
 0x109   :  { %v133_v27 = vmax.f32 %v127_v26, 0.0  ;;  %v476_v28 = vpop.f32.mrb[1].mxu0 }
 0x10a   :  { %v130_v29 = vpop.f32.mrb[2].mxu0 }
 0x10b   :  { %v134_v30 = vpack.c.bf16 %v133_v27, %v133_v27  ;;  %v477_v31 = vpop.f32.mrb[3].mxu0 }
 0x10d   :  { %495 = vmatmul.mubr.bf16.vlgmr.msra.gmra.mrb[0].mxu1 %v134_v30 }
 0x1e0   :  { %v234_v33 = vpop.f32.mrb[0].mxu1 }
 0x1e1   :  { %v240_v34 = vmax.f32 %v234_v33, 0.0  ;;  %v496_v35 = vpop.f32.mrb[1].mxu1 }
 0x1e2   :  { %v237_v36 = vpop.f32.mrb[2].mxu1 }
 0x1e3   :  { %v241_v37 = vpack.c.bf16 %v240_v34, %v240_v34  ;;  %v497_v38 = vpop.f32.mrb[3].mxu1 }
 0x1e5   :  { %515 = vmatmul.mubr.bf16.vlgmr.msra.gmra.mrb[4].mxu0 %v241_v37 }
 0x2b8   :  { %v341_v41 = vpop.f32.mrb[4].mxu0 }
 0x2b9   :  { %v349_v42 = vsub.f32 %v341_v41, %v348_v40  ;;  %v516_v43 = vpop.f32.mrb[5].mxu0 }
 0x2ba   :  { %v344_v44 = vpop.f32.mrb[6].mxu0 }
 0x2bb   :  { %v517_v45 = vpop.f32.mrb[7].mxu0  ;;  %v353_v46 = vsel %vm352_vm1, %v349_v42, -inf }
 0x2bc   :  { %354 = vmax.xlane.f32.xlu0 %v353_v46 }
 0x349   :  { %v355_v47 = vpop.xlane.xlu0 %354 }
 0x34a   :  { %v356_v48 = vrot.slane %v355_v47, 4 }
 0x34c   :  { %v357_v49 = vmax.f32 %v355_v47, %v356_v48 }
 0x34e   :  { %v358_v50 = vrot.slane %v357_v49, 2 }
 0x350   :  { %v359_v51 = vmax.f32 %v357_v49, %v358_v50 }
 0x352   :  { %v360_v52 = vrot.slane %v359_v51, 1 }
 0x354   :  { %v361_v53 = vmax.f32 %v359_v51, %v360_v52 }
 0x356   :  { %518 = vpush %v361_v53 }
 0x387   :  { %s519_s0 = spop %518 }
 0x388   :  { %v363_v56 = vstv %s519_s0 }
 0x389   :  { %vm364_vm2 = vcmp.eq.f32.partialorder %v349_v42, %v363_v56 }
 0x38a   :  { %v365_v57 = vsel %vm364_vm2, %v351_v55, 128 }
 0x38b   :  { %v366_v58 = vsel %vm352_vm1, %v365_v57, 2147483647 }
 0x38c   :  { %v368_v59 = vshra.s32 %v366_v58, 16  ;;  %v367_v61 = vand.u32 65535, %v366_v58 }
 0x38e   :  { %v370_v60 = vcvt.s32.f32 %v368_v59  ;;  %v369_v63 = vcvt.s32.f32 %v367_v61 }
 0x390   :  { %371 = vmin.xlane.f32.xlu0 %v370_v60 }
 0x41d   :  { %v372_v62 = vpop.xlane.xlu0 %371 }
 0x41e   :  { %vm373_vm3 = vcmp.eq.f32.partialorder %v370_v60, %v372_v62  ;;  %v378_v1 = vcvt.f32.s32 %v372_v62 }
 0x41f   :  { %v374_v0 = vsel %vm373_vm3, %v369_v63, inf }
 0x420   :  { %375 = vmin.xlane.f32.xlu1 %v374_v0  ;;  %v379_v3 = vshll.u32 %v378_v1, 16 }
 0x4ad   :  { %v376_v2 = vpop.xlane.xlu1 %375 }
 0x4ae   :  { %v377_v4 = vcvt.f32.s32 %v376_v2 }
 0x4b0   :  { %v380_v5 = vadd.s32 %v379_v3, %v377_v4 }
 0x4b2   :  { %v381_v6 = vrot.slane %v380_v5, 4 }
 0x4b4   :  { %vm382_vm4 = vcmp.lt.s32.totalorder %v380_v5, %v381_v6 }
 0x4b5   :  { %v383_v7 = vsel %vm382_vm4, %v380_v5, %v381_v6 }
 0x4b6   :  { %v384_v8 = vrot.slane %v383_v7, 2 }
 0x4b8   :  { %vm385_vm5 = vcmp.lt.s32.totalorder %v383_v7, %v384_v8 }
 0x4b9   :  { %v386_v9 = vsel %vm385_vm5, %v383_v7, %v384_v8 }
 0x4ba   :  { %v387_v10 = vrot.slane %v386_v9, 1 }
 0x4bc   :  { %vm388_vm6 = vcmp.lt.s32.totalorder %v386_v9, %v387_v10 }
 0x4bd   :  { %v389_v11 = vsel %vm388_vm6, %v386_v9, %v387_v10 }
 0x4be   :  { %520 = vpush %v389_v11 }
 0x4ef   :  { %s521_s24 = spop %520 }
 0x4f0   :  { %392 = sst [smem:[#allocation5]] %s521_s24 }
 0x4f1   :  { %583 = shalt.err (!%p580_p10)
}
 0x4f2   :  { %s593_s4 = smov [#allocation5]  }
 0x4f3   :  { %400 = dma.smem_to_hbm %s593_s4, 16, %s670_s2, [#allocation4]  }
 0x4f4   :  { %586 = dma.done.wait [#allocation4], 16  }
 0x4f5   :  { %587 = vsyncadd [#allocation4], 4294967280 }
 0x4f6   :  { %404 = sfence }
 0x4f7   :  { %405 = vsyncpa [#allocation3], 1 }
 0x4f8   :  { %406 = vsyncpa [#allocation4], 1 }

</bundles_post_ra>
